<compile_context>
chip_gen: v7x
topology: tpu7x:2x2x1
jax: 0.10.0
libtpu: 0.0.40
codegen_flags: <defaults>
</compile_context>

<pallas_src>
import functools

import jax
import jax.numpy as jnp
from jax.experimental import pallas as pl
from jax.experimental.pallas import tpu as pltpu


# ---------------------------------------------------------------------------
# VMEM budgets (generation aware) and tile sizing
# ---------------------------------------------------------------------------
@functools.lru_cache(maxsize=None)
def _vmem_budgets():
    """Returns (streaming_tile_budget_bytes, vmem_limit_bytes)."""
    cap = 128 * 1024 * 1024
    try:
        info = pltpu.get_tpu_info()
        cap = int(getattr(info, "vmem_capacity_bytes", cap))
    except Exception:
        pass
    if cap <= 64 * 1024 * 1024:
        # v7x-class: 64 MiB VMEM per TensorCore -> leave headroom for f32 temps.
        return 14 * 1024 * 1024, 40 * 1024 * 1024
    # v5e / v6e: 128 MiB VMEM -> keep row tiles big at large C.
    return 48 * 1024 * 1024, 96 * 1024 * 1024


def _round_up(x, m):
    return ((x + m - 1) // m) * m


def _pick_row_tile(n_rows, stream_bytes_per_row, temp_bytes_per_row, min_tiles=2):
    """Rows per tile: multiple of 8, sized so that the double-buffered input
    streams PLUS the in-kernel f32 intermediates fit the streaming budget, and
    capped so the grid has >= min_tiles steps when n_rows permits (megacore)."""
    if n_rows <= 8:
        return n_rows  # block equals full array dim -> legal, single tile
    budget = _vmem_budgets()[0]
    per_row = 2 * stream_bytes_per_row + temp_bytes_per_row
    cap = max(8, (budget // max(1, per_row)) // 8 * 8)
    tb = min(512, cap)
    tb = min(tb, _round_up(pl.cdiv(n_rows, min_tiles), 8))
    return max(8, (tb // 8) * 8)


# ---------------------------------------------------------------------------
# Kernel 1: fused CrossEntropy + KD (KLDiv of tempered softmaxes) over logits,
#           batch-tiled, lane-dense per-tile partial sums.
# ---------------------------------------------------------------------------
def _ce_kd_kernel(net_ref, tch_ref, lab_ref, ce_ref, kd_ref, *,
                  temp, n_rows, tb, needs_mask):
    net = net_ref[...].astype(jnp.float32)        # (TB, C)
    tch = tch_ref[...].astype(jnp.float32)        # (TB, C)
    labels = lab_ref[...]                         # (TB, 1) int32
    TB, C = net.shape

    if needs_mask:
        # Ragged last tile: zero out-of-range rows BEFORE any exp (garbage in
        # the OOB region must not reach the transcendentals), and mask the
        # per-row partials below.
        row_ids = (pl.program_id(0) * tb
                   + jax.lax.broadcasted_iota(jnp.int32, (TB, 1), 0))
        row_mask = row_ids < n_rows
        rm_f = row_mask.astype(jnp.float32)
        net = jnp.where(row_mask, net, 0.0)
        tch = jnp.where(row_mask, tch, 0.0)

    cls_ids = jax.lax.broadcasted_iota(jnp.int32, (TB, C), 1)

    # --- CrossEntropy per-row: lse(net) - net[label] -------------------------
    m = jnp.max(net, axis=1, keepdims=True)                       # (TB, 1)
    lse = jnp.log(jnp.sum(jnp.exp(net - m), axis=1, keepdims=True)) + m
    net_at_lab = jnp.sum(jnp.where(cls_ids == labels, net, 0.0),
                         axis=1, keepdims=True)
    ce_rows = lse - net_at_lab                                     # (TB, 1)

    # --- KD per-row, decomposed (sum_c q == 1 per row) -----------------------
    #   sum_c q*(logq - logp_n) = sum_c q*logq - (1/T)*sum_c q*net + lse_n
    inv_t = 1.0 / temp
    net_t = net * inv_t
    tch_t = tch * inv_t

    mn = m * inv_t                               # reuse: max(net/T) = max(net)/T
    lse_n = jnp.log(jnp.sum(jnp.exp(net_t - mn), axis=1, keepdims=True)) + mn

    mt = jnp.max(tch_t, axis=1, keepdims=True)
    et = jnp.exp(tch_t - mt)
    st = jnp.sum(et, axis=1, keepdims=True)
    q = et * (1.0 / st)                          # softmax(teacher/T), no 2nd exp
    logq = (tch_t - mt) - jnp.log(st)            # log_softmax(teacher/T)

    q_logq = jnp.sum(q * logq, axis=1, keepdims=True)
    q_net = jnp.sum(q * net, axis=1, keepdims=True)
    kd_rows = q_logq - inv_t * q_net + lse_n                       # (TB, 1)

    if needs_mask:
        ce_rows = ce_rows * rm_f
        kd_rows = kd_rows * rm_f

    ce_p = jnp.sum(ce_rows)
    kd_p = jnp.sum(kd_rows)

    # Lane-dense (1, 1, 128) per-tile partial outputs.
    ce_ref[...] = jnp.full(ce_ref.shape, ce_p, dtype=jnp.float32)
    kd_ref[...] = jnp.full(kd_ref.shape, kd_p, dtype=jnp.float32)


def ce_kd_losses(net_logits, teacher_logits, label_id, temp):
    B, C = net_logits.shape
    itemsize = jnp.dtype(net_logits.dtype).itemsize
    stream_bytes_per_row = 2 * C * itemsize       # both logit streams
    temp_bytes_per_row = 6 * C * 4                # ~6 (TB,C) f32 intermediates

    tb = _pick_row_tile(B, stream_bytes_per_row, temp_bytes_per_row,
                        min_tiles=2)
    num_tiles = pl.cdiv(B, tb)
    needs_mask = (B % tb) != 0

    labels2d = label_id.reshape(B, 1).astype(jnp.int32)

    cost = pl.CostEstimate(
        flops=18 * B * C,
        transcendentals=3 * B * C,
        bytes_accessed=2 * B * C * itemsize + B * 4 + num_tiles * 2 * 128 * 4,
    )

    ce_part, kd_part = pl.pallas_call(
        functools.partial(_ce_kd_kernel, temp=float(temp), n_rows=B, tb=tb,
                          needs_mask=needs_mask),
        grid=(num_tiles,),
        in_specs=[
            pl.BlockSpec((tb, C), lambda i: (i, 0)),
            pl.BlockSpec((tb, C), lambda i: (i, 0)),
            pl.BlockSpec((tb, 1), lambda i: (i, 0)),
        ],
        out_specs=(
            pl.BlockSpec((1, 1, 128), lambda i: (i, 0, 0)),
            pl.BlockSpec((1, 1, 128), lambda i: (i, 0, 0)),
        ),
        out_shape=(
            jax.ShapeDtypeStruct((num_tiles, 1, 128), jnp.float32),
            jax.ShapeDtypeStruct((num_tiles, 1, 128), jnp.float32),
        ),
        compiler_params=pltpu.CompilerParams(
            dimension_semantics=("parallel",),
            vmem_limit_bytes=_vmem_budgets()[1],
        ),
        cost_estimate=cost,
    )(net_logits, teacher_logits, labels2d)

    ce = jnp.sum(ce_part[:, 0, 0]) / B
    # nn.KLDivLoss() default reduction='mean' averages over ALL B*C elements.
    kd = jnp.sum(kd_part[:, 0, 0]) * (float(temp) * float(temp)) / (B * C)
    return ce, kd


# ---------------------------------------------------------------------------
# Kernel 2: MSE sum-of-squares per feature pair (no wrapper-side stack copies).
# ---------------------------------------------------------------------------
def _mse_kernel(f_ref, t_ref, out_ref, *, n_rows, tb, needs_mask):
    d = f_ref[...].astype(jnp.float32) - t_ref[...].astype(jnp.float32)
    if needs_mask:
        row_ids = (pl.program_id(0) * tb
                   + jax.lax.broadcasted_iota(jnp.int32, d.shape, 0))
        d = jnp.where(row_ids < n_rows, d, 0.0)
    p = jnp.sum(d * d)
    out_ref[...] = jnp.full(out_ref.shape, p, dtype=jnp.float32)


def _mse_pair_sum_sq(f, t):
    """Sum of squared differences of one (net_feat, teacher_feat) pair."""
    last = f.shape[-1]
    f2 = f.reshape(-1, last)      # merging leading dims: free for row-major
    t2 = t.reshape(-1, last)
    rows = f2.shape[0]
    numel = rows * last
    itemsize = max(jnp.dtype(f2.dtype).itemsize, jnp.dtype(t2.dtype).itemsize)

    tb = _pick_row_tile(rows, 2 * last * itemsize, 2 * last * 4, min_tiles=2)
    num_tiles = pl.cdiv(rows, tb)
    needs_mask = (rows % tb) != 0

    cost = pl.CostEstimate(
        flops=3 * numel,
        transcendentals=0,
        bytes_accessed=2 * numel * itemsize + num_tiles * 128 * 4,
    )

    part = pl.pallas_call(
        functools.partial(_mse_kernel, n_rows=rows, tb=tb,
                          needs_mask=needs_mask),
        grid=(num_tiles,),
        in_specs=[
            pl.BlockSpec((tb, last), lambda i: (i, 0)),
            pl.BlockSpec((tb, last), lambda i: (i, 0)),
        ],
        out_specs=pl.BlockSpec((1, 1, 128), lambda i: (i, 0, 0)),
        out_shape=jax.ShapeDtypeStruct((num_tiles, 1, 128), jnp.float32),
        compiler_params=pltpu.CompilerParams(
            dimension_semantics=("parallel",),
            vmem_limit_bytes=_vmem_budgets()[1],
        ),
        cost_estimate=cost,
    )(f2, t2)

    return jnp.sum(part[:, 0, 0]), numel


def mse_loss(net_feats, teacher_feats):
    # Matches: (1/N) * sum_i MSELoss(net_feats[i], teacher_feats[i+1])
    # (per-pair mean, so differing feature shapes are handled correctly).
    n = len(net_feats)
    total = jnp.float32(0.0)
    for i, f in enumerate(net_feats):
        ssq, numel = _mse_pair_sum_sq(f, teacher_feats[i + 1])
        total = total + ssq / numel
    return total / n


# ---------------------------------------------------------------------------
# CE_KD_MSELoss.forward equivalent
# ---------------------------------------------------------------------------
def ce_kd_mse_loss(net_out, teacher_out, batch, *, temp, alpha, beta, lamda):
    ce, kd = ce_kd_losses(net_out["logits"], teacher_out["logits"],
                          batch["label_id"], temp)
    mse = mse_loss(net_out["feats"], teacher_out["feats"])
    return {
        "ce_loss": ce,
        "kd_loss": kd,
        "mse_loss": mse,
        "loss": lamda * ce + alpha * kd + beta * mse,
    }


if __name__ == "__main__":
    key = jax.random.PRNGKey(0)
    B, C, H = 4, 16, 32
    n_feats = 2
    temp, alpha, beta, lamda = 4.0, 0.5, 0.3, 1.0

    ks = jax.random.split(key, 8)
    net_logits = jax.random.normal(ks[0], (B, C), dtype=jnp.float32)
    teacher_logits = jax.random.normal(ks[1], (B, C), dtype=jnp.float32)
    label_id = jax.random.randint(ks[2], (B,), 0, C, dtype=jnp.int32)

    net_feats = [jax.random.normal(ks[3 + i], (B, H), dtype=jnp.float32)
                 for i in range(n_feats)]
    teacher_feats = [jax.random.normal(ks[5 + i], (B, H), dtype=jnp.float32)
                     for i in range(n_feats + 1)]  # teacher has one extra feat

    net_out = {"logits": net_logits, "feats": net_feats}
    teacher_out = {"logits": teacher_logits, "feats": teacher_feats}
    batch = {"label_id": label_id}

    out = ce_kd_mse_loss(net_out, teacher_out, batch,
                         temp=temp, alpha=alpha, beta=beta, lamda=lamda)
    jax.block_until_ready(out["loss"])

    # Correctness check against a pure-JAX reference (matches the PyTorch
    # module with nn.KLDivLoss() default reduction='mean').
    def ref():
        logp = jax.nn.log_softmax(net_logits, axis=1)
        ce = -jnp.mean(logp[jnp.arange(B), label_id])
        logpn = jax.nn.log_softmax(net_logits / temp, axis=1)
        q = jax.nn.softmax(teacher_logits / temp, axis=1)
        kd = jnp.mean(q * (jnp.log(q) - logpn)) * temp * temp
        mse = sum(jnp.mean((f - teacher_feats[i + 1]) ** 2)
                  for i, f in enumerate(net_feats)) / n_feats
        return ce, kd, mse, lamda * ce + alpha * kd + beta * mse

    rce, rkd, rmse, rloss = ref()
    assert jnp.allclose(out["ce_loss"], rce, atol=1e-5), (out["ce_loss"], rce)
    assert jnp.allclose(out["kd_loss"], rkd, atol=1e-5), (out["kd_loss"], rkd)
    assert jnp.allclose(out["mse_loss"], rmse, atol=1e-5), (out["mse_loss"], rmse)
    assert jnp.allclose(out["loss"], rloss, atol=1e-5), (out["loss"], rloss)

    print("KERNEL_OK")
</pallas_src>

<mosaic_0001>
module attributes {stable_mosaic.version = 11 : i64} {
  func.func @_ce_kd_kernel(%arg0: i32, %arg1: memref<4x16xf32, #tpu.memory_space<vmem>>, %arg2: memref<4x16xf32, #tpu.memory_space<vmem>>, %arg3: memref<4x1xi32, #tpu.memory_space<vmem>>, %arg4: memref<1x1x128xf32, #tpu.memory_space<vmem>>, %arg5: memref<1x1x128xf32, #tpu.memory_space<vmem>>) attributes {dimension_semantics = [#tpu.dimension_semantics<parallel>], iteration_bounds = array<i64: 1>, scalar_prefetch = 0 : i64, scratch_operands = 0 : i64, tpu.core_type = #tpu.core_type<tc>, window_params = [{transform_indices = @transform_0, window_bounds = array<i64: 4, 16>}, {transform_indices = @transform_1, window_bounds = array<i64: 4, 16>}, {transform_indices = @transform_2, window_bounds = array<i64: 4, 1>}, {transform_indices = @transform_3, window_bounds = array<i64: 1, 1, 128>}, {transform_indices = @transform_4, window_bounds = array<i64: 1, 1, 128>}]} {
    %c0 = arith.constant 0 : index
    %c0_0 = arith.constant 0 : index
    %0 = vector.load %arg1[%c0, %c0_0] : memref<4x16xf32, #tpu.memory_space<vmem>>, vector<4x16xf32>
    %c0_1 = arith.constant 0 : index
    %c0_2 = arith.constant 0 : index
    %1 = vector.load %arg2[%c0_1, %c0_2] : memref<4x16xf32, #tpu.memory_space<vmem>>, vector<4x16xf32>
    %c0_3 = arith.constant 0 : index
    %c0_4 = arith.constant 0 : index
    %2 = vector.load %arg3[%c0_3, %c0_4] : memref<4x1xi32, #tpu.memory_space<vmem>>, vector<4x1xi32>
    %3 = tpu.iota {dimensions = array<i32: 1>} : vector<4x16xi32>
    %cst = arith.constant dense<0xFF800000> : vector<4xf32>
    %4 = vector.multi_reduction <maximumf>, %0, %cst [1] : vector<4x16xf32> to vector<4xf32>
    %5 = vector.shape_cast %4 : vector<4xf32> to vector<4x1xf32>
    %6 = vector.broadcast %5 : vector<4x1xf32> to vector<4x16xf32>
    %7 = arith.subf %0, %6 : vector<4x16xf32>
    %8 = math.exp %7 : vector<4x16xf32>
    %cst_5 = arith.constant dense<0.000000e+00> : vector<4xf32>
    %9 = vector.multi_reduction <add>, %8, %cst_5 [1] : vector<4x16xf32> to vector<4xf32>
    %10 = vector.shape_cast %9 : vector<4xf32> to vector<4x1xf32>
    %11 = math.log %10 : vector<4x1xf32>
    %12 = arith.addf %11, %5 : vector<4x1xf32>
    %13 = vector.broadcast %2 : vector<4x1xi32> to vector<4x16xi32>
    %14 = arith.cmpi eq, %3, %13 : vector<4x16xi32>
    %cst_6 = arith.constant 0.000000e+00 : f32
    %15 = vector.broadcast %cst_6 : f32 to vector<4x16xf32>
    %16 = arith.select %14, %0, %15 : vector<4x16xi1>, vector<4x16xf32>
    %cst_7 = arith.constant dense<0.000000e+00> : vector<4xf32>
    %17 = vector.multi_reduction <add>, %16, %cst_7 [1] : vector<4x16xf32> to vector<4xf32>
    %18 = vector.shape_cast %17 : vector<4xf32> to vector<4x1xf32>
    %19 = arith.subf %12, %18 : vector<4x1xf32>
    %cst_8 = arith.constant 2.500000e-01 : f32
    %20 = vector.broadcast %cst_8 : f32 to vector<4x16xf32>
    %21 = arith.mulf %0, %20 : vector<4x16xf32>
    %cst_9 = arith.constant 2.500000e-01 : f32
    %22 = vector.broadcast %cst_9 : f32 to vector<4x16xf32>
    %23 = arith.mulf %1, %22 : vector<4x16xf32>
    %cst_10 = arith.constant 2.500000e-01 : f32
    %24 = vector.broadcast %cst_10 : f32 to vector<4x1xf32>
    %25 = arith.mulf %5, %24 : vector<4x1xf32>
    %26 = vector.broadcast %25 : vector<4x1xf32> to vector<4x16xf32>
    %27 = arith.subf %21, %26 : vector<4x16xf32>
    %28 = math.exp %27 : vector<4x16xf32>
    %cst_11 = arith.constant dense<0.000000e+00> : vector<4xf32>
    %29 = vector.multi_reduction <add>, %28, %cst_11 [1] : vector<4x16xf32> to vector<4xf32>
    %30 = vector.shape_cast %29 : vector<4xf32> to vector<4x1xf32>
    %31 = math.log %30 : vector<4x1xf32>
    %32 = arith.addf %31, %25 : vector<4x1xf32>
    %cst_12 = arith.constant dense<0xFF800000> : vector<4xf32>
    %33 = vector.multi_reduction <maximumf>, %23, %cst_12 [1] : vector<4x16xf32> to vector<4xf32>
    %34 = vector.shape_cast %33 : vector<4xf32> to vector<4x1xf32>
    %35 = vector.broadcast %34 : vector<4x1xf32> to vector<4x16xf32>
    %36 = arith.subf %23, %35 : vector<4x16xf32>
    %37 = math.exp %36 : vector<4x16xf32>
    %cst_13 = arith.constant dense<0.000000e+00> : vector<4xf32>
    %38 = vector.multi_reduction <add>, %37, %cst_13 [1] : vector<4x16xf32> to vector<4xf32>
    %39 = vector.shape_cast %38 : vector<4xf32> to vector<4x1xf32>
    %cst_14 = arith.constant 1.000000e+00 : f32
    %40 = vector.broadcast %cst_14 : f32 to vector<4x1xf32>
    %41 = arith.divf %40, %39 : vector<4x1xf32>
    %42 = vector.broadcast %41 : vector<4x1xf32> to vector<4x16xf32>
    %43 = arith.mulf %37, %42 : vector<4x16xf32>
    %44 = vector.broadcast %34 : vector<4x1xf32> to vector<4x16xf32>
    %45 = arith.subf %23, %44 : vector<4x16xf32>
    %46 = math.log %39 : vector<4x1xf32>
    %47 = vector.broadcast %46 : vector<4x1xf32> to vector<4x16xf32>
    %48 = arith.subf %45, %47 : vector<4x16xf32>
    %49 = arith.mulf %43, %48 : vector<4x16xf32>
    %cst_15 = arith.constant dense<0.000000e+00> : vector<4xf32>
    %50 = vector.multi_reduction <add>, %49, %cst_15 [1] : vector<4x16xf32> to vector<4xf32>
    %51 = vector.shape_cast %50 : vector<4xf32> to vector<4x1xf32>
    %52 = arith.mulf %43, %0 : vector<4x16xf32>
    %cst_16 = arith.constant dense<0.000000e+00> : vector<4xf32>
    %53 = vector.multi_reduction <add>, %52, %cst_16 [1] : vector<4x16xf32> to vector<4xf32>
    %54 = vector.shape_cast %53 : vector<4xf32> to vector<4x1xf32>
    %cst_17 = arith.constant 2.500000e-01 : f32
    %55 = vector.broadcast %cst_17 : f32 to vector<4x1xf32>
    %56 = arith.mulf %55, %54 : vector<4x1xf32>
    %57 = arith.subf %51, %56 : vector<4x1xf32>
    %58 = arith.addf %57, %32 : vector<4x1xf32>
    %59 = vector.shape_cast %19 : vector<4x1xf32> to vector<1x4x1xf32>
    %cst_18 = arith.constant dense<0.000000e+00> : vector<1xf32>
    %60 = vector.multi_reduction <add>, %59, %cst_18 [1, 2] : vector<1x4x1xf32> to vector<1xf32>
    %61 = vector.shape_cast %60 : vector<1xf32> to vector<1x1x1xf32>
    %62 = vector.extract %61[0, 0, 0] : f32 from vector<1x1x1xf32>
    %63 = vector.shape_cast %58 : vector<4x1xf32> to vector<1x4x1xf32>
    %cst_19 = arith.constant dense<0.000000e+00> : vector<1xf32>
    %64 = vector.multi_reduction <add>, %63, %cst_19 [1, 2] : vector<1x4x1xf32> to vector<1xf32>
    %65 = vector.shape_cast %64 : vector<1xf32> to vector<1x1x1xf32>
    %66 = vector.extract %65[0, 0, 0] : f32 from vector<1x1x1xf32>
    %67 = vector.broadcast %62 : f32 to vector<1x1x128xf32>
    %c0_20 = arith.constant 0 : index
    %c0_21 = arith.constant 0 : index
    %c0_22 = arith.constant 0 : index
    %68 = vector.load %arg4[%c0_20, %c0_21, %c0_22] : memref<1x1x128xf32, #tpu.memory_space<vmem>>, vector<1x1x128xf32>
    tpu.vector_store %arg4[%c0_20, %c0_21, %c0_22], %67 {strides = array<i32>} : memref<1x1x128xf32, #tpu.memory_space<vmem>>, vector<1x1x128xf32>,
    %69 = vector.broadcast %66 : f32 to vector<1x1x128xf32>
    %c0_23 = arith.constant 0 : index
    %c0_24 = arith.constant 0 : index
    %c0_25 = arith.constant 0 : index
    %70 = vector.load %arg5[%c0_23, %c0_24, %c0_25] : memref<1x1x128xf32, #tpu.memory_space<vmem>>, vector<1x1x128xf32>
    tpu.vector_store %arg5[%c0_23, %c0_24, %c0_25], %69 {strides = array<i32>} : memref<1x1x128xf32, #tpu.memory_space<vmem>>, vector<1x1x128xf32>,
    return
  }
  func.func @transform_0(%arg0: i32) -> (i32, i32) {
    %c0_i32 = arith.constant 0 : i32
    %c0_i32_0 = arith.constant 0 : i32
    return %arg0, %c0_i32 : i32, i32
  }
  func.func @transform_1(%arg0: i32) -> (i32, i32) {
    %c0_i32 = arith.constant 0 : i32
    %c0_i32_0 = arith.constant 0 : i32
    return %arg0, %c0_i32 : i32, i32
  }
  func.func @transform_2(%arg0: i32) -> (i32, i32) {
    %c0_i32 = arith.constant 0 : i32
    %c0_i32_0 = arith.constant 0 : i32
    return %arg0, %c0_i32 : i32, i32
  }
  func.func @transform_3(%arg0: i32) -> (i32, i32, i32) {
    %c0_i32 = arith.constant 0 : i32
    %c0_i32_0 = arith.constant 0 : i32
    %c0_i32_1 = arith.constant 0 : i32
    return %arg0, %c0_i32, %c0_i32_0 : i32, i32, i32
  }
  func.func @transform_4(%arg0: i32) -> (i32, i32, i32) {
    %c0_i32 = arith.constant 0 : i32
    %c0_i32_0 = arith.constant 0 : i32
    %c0_i32_1 = arith.constant 0 : i32
    return %arg0, %c0_i32, %c0_i32_0 : i32, i32, i32
  }
}

</mosaic_0001>

<bundles_post_ra>
// kernel: tpu_custom_call.1
= control target key start
LH: loop header
LB: loop body
LE: loop exit
PB: predicated region body
PF: predicated region fallthrough
CT: control target
= control target key end

     0   :  { %10 = vsyncpa [#allocation3], 0  ;;  %s416_s0 = inlined_call_operand.hbm [shape: f32[4,16], index: 0, kind: input, shape index: {}]   ;;  %s417_s1 = inlined_call_operand.hbm [shape: f32[4,16], index: 1, kind: input, shape index: {}]   ;;  %s418_s2 = inlined_call_operand.hbm [shape: s32[4,1], index: 2, kind: input, shape index: {}]   ;;  %s419_s3 = inlined_call_operand.hbm [shape: f32[1,1,128], index: 3, kind: output, shape index: {0}]   ;;  %s420_s4 = inlined_call_operand.hbm [shape: f32[1,1,128], index: 4, kind: output, shape index: {1}]  }
   0x1   :  { %11 = vsyncpa [#allocation6], 0 }
   0x2   :  { %12 = vsyncpa [#allocation4], 0 }
   0x3   :  { %13 = vsyncpa [#allocation10], 0  ;;  %s317_s15 = smov [#allocation5]   ;;  %s318_s17 = smov [#allocation2]  }
   0x4   :  { %s30_s16 = sshll.u32 %s317_s15, 4  ;;  %s20_s18 = sshll.u32 %s318_s17, 4  ;;  %s31_s16 = int_to_ptr.vmem [resolvable:$true] %s30_s16  ;;  %s21_s18 = int_to_ptr.vmem [resolvable:$true] %s20_s18 }
   0x5   :  { %s199_s21 = scalar_lea.hbm %s417_s1, 64 }
   0x6   :  { %p200_p0 = scmp.ne.s32.totalorder %s417_s1, %s199_s21  ;;  %p203_p1 = scmp.lt.u32.totalorder %s199_s21, %s417_s1 }
   0x8   :  { %p205_p2 = pnand %p203_p1, %p200_p0 }
   0xa   :  { %208 = shalt.err (!%p205_p2)
}
   0xb   :  { %s209_s26 = scalar_lea.vmem %s31_s16, 64  ;;  %p214_p4 = scmp.lt.s32.totalorder %s31_s16, %s31_s16 }
   0xc   :  { %p210_p3 = scmp.ne.s32.totalorder %s31_s16, %s209_s26  ;;  %p215_p5 = scmp.lt.s32.totalorder %s209_s26, %s209_s26 }
   0xe   :  { %p216_p6 = por %p215_p5, %p214_p4 }
  0x10   :  { %p217_p7 = pnand %p216_p6, %p210_p3 }
  0x12   :  { %220 = shalt.err (!%p217_p7)
}
  0x13   :  { %33 = dma.hbm_to_vmem [thread:$0]  %s417_s1, 64, %s31_s16, [#allocation6]  }
  0x14   :  { %s221_s5 = scalar_lea.hbm %s416_s0, 64 }
  0x15   :  { %p222_p8 = scmp.ne.s32.totalorder %s416_s0, %s221_s5  ;;  %p225_p9 = scmp.lt.u32.totalorder %s221_s5, %s416_s0 }
  0x17   :  { %p227_p10 = pnand %p225_p9, %p222_p8 }
  0x19   :  { %230 = shalt.err (!%p227_p10)
}
  0x1a   :  { %s231_s10 = scalar_lea.vmem %s21_s18, 64  ;;  %p236_p12 = scmp.lt.s32.totalorder %s21_s18, %s21_s18 }
  0x1b   :  { %p232_p11 = scmp.ne.s32.totalorder %s21_s18, %s231_s10  ;;  %p237_p13 = scmp.lt.s32.totalorder %s231_s10, %s231_s10 }
  0x1d   :  { %p238_p0 = por %p237_p13, %p236_p12 }
  0x1f   :  { %p239_p1 = pnand %p238_p0, %p232_p11 }
  0x21   :  { %242 = shalt.err (!%p239_p1)
}
  0x22   :  { %23 = dma.hbm_to_vmem [thread:$0]  %s416_s0, 64, %s21_s18, [#allocation3]  }
  0x23   :  { %s319_s12 = smov [#allocation7]   ;;  %s243_s16 = scalar_lea.hbm %s418_s2, 64 }
  0x24   :  { %s40_s13 = sshll.u32 %s319_s12, 4  ;;  %p244_p2 = scmp.ne.s32.totalorder %s418_s2, %s243_s16  ;;  %s41_s13 = int_to_ptr.vmem [resolvable:$true] %s40_s13 }
  0x25   :  { %p247_p3 = scmp.lt.u32.totalorder %s243_s16, %s418_s2 }
  0x27   :  { %p249_p4 = pnand %p247_p3, %p244_p2 }
  0x29   :  { %252 = shalt.err (!%p249_p4)
}
  0x2a   :  { %s253_s22 = scalar_lea.vmem %s41_s13, 64  ;;  %p258_p6 = scmp.lt.s32.totalorder %s41_s13, %s41_s13 }
  0x2b   :  { %p254_p5 = scmp.ne.s32.totalorder %s41_s13, %s253_s22  ;;  %p259_p7 = scmp.lt.s32.totalorder %s253_s22, %s253_s22 }
  0x2d   :  { %p260_p8 = por %p259_p7, %p258_p6 }
  0x2f   :  { %p261_p9 = pnand %p260_p8, %p254_p5 }
  0x31   :  { %264 = shalt.err (!%p261_p9)
}
  0x32   :  { %43 = dma.hbm_to_vmem [thread:$0]  %s418_s2, 64, %s41_s13, [#allocation6]  }
  0x33   :  { %309 = dma.done.wait [#allocation3], 64  }
  0x34   :  { %310 = vsyncadd [#allocation3], 4294967232 }
  0x35   :  { %311 = dma.done.wait [#allocation6], 128  }
  0x36   :  { %312 = vsyncadd [#allocation6], 4294967168  ;;  %v54_v0 = vld [vmem:[#allocation5] sm:$0xf]  ;;  %vm58_vm0 = vcmask 125952   ;;  %v320_v5 = vmov 0   ;;  %v56_v23 = vlaneseq }
  0x37   :  { %v81_v1 = vmul.f32 0.25, %v54_v0  ;;  %v53_v2 = vld [vmem:[#allocation2] sm:$0xf]  ;;  %183 = vset.pattern.permute.xlu1 %v320_v5  ;;  %184 = vset.pattern.permute.xlu0 %v320_v5  ;;  %v55_v22 = vld [vmem:[#allocation7] sm:$0xf]  ;;  %vm118_vm2 = vcmask 3072  }
  0x38   :  { %v59_v4 = vsel %vm58_vm0, %v53_v2, -inf  ;;  %v80_v9 = vmul.f32 0.25, %v53_v2  ;;  %v57_v25 = vand.u32 127, %v56_v23  ;;  %s321_s2 = smov [#allocation8]  }
  0x39   :  { %v92_v3 = vsel %vm58_vm0, %v81_v1, -inf  ;;  %s149_s23 = sshll.u32 %s321_s2, 4  ;;  %s150_s23 = int_to_ptr.vmem [resolvable:$true] %s149_s23 }
  0x3a   :  { %93 = vmax.xlane.f32.xlu0 %v92_v3  ;;  %s265_s25 = scalar_lea.vmem %s150_s23, 16  ;;  %s269_s26 = scalar_lea.vmem %s150_s23, 32 }
  0x3b   :  { %p266_p10 = scmp.ne.s32.totalorder %s150_s23, %s265_s25  ;;  %p270_p11 = scmp.lt.s32.totalorder %s150_s23, %s150_s23 }
  0x3c   :  { %p271_p12 = scmp.lt.s32.totalorder %s269_s26, %s265_s25 }
  0x3e   :  { %60 = vmax.xlane.f32.xlu0 %v59_v4  ;;  %p272_p13 = por %p271_p12, %p270_p11 }
  0x40   :  { %p273_p0 = pnand %p272_p13, %p266_p10 }
  0xc7   :  { %v94_v6 = vpop.xlane.xlu0 %93 }
  0xc8   :  { %v95_v7 = vsub.f32 %v81_v1, %v94_v6 }
  0xca   :  { %v96_v8 = vmul.f32 1.442695, %v95_v7 }
  0xcb   :  { %v61_v10 = vpop.xlane.xlu0 %60 }
  0xcc   :  { %185 = vpow2.f32 %v96_v8  ;;  %v62_v11 = vsub.f32 %v53_v2, %v61_v10  ;;  %v82_v12 = vmul.f32 0.25, %v61_v10 }
  0xce   :  { %v63_v13 = vmul.f32 1.442695, %v62_v11  ;;  %v83_v14 = vsub.f32 %v80_v9, %v82_v12 }
  0xd0   :  { %187 = vpow2.f32 %v63_v13  ;;  %v84_v15 = vmul.f32 1.442695, %v83_v14 }
  0xd2   :  { %189 = vpow2.f32 %v84_v15 }
  0xd6   :  { %v186_v16 = vpop.eup %185 }
  0xd7   :  { %v98_v17 = vsel %vm58_vm0, %v186_v16, 0.0 }
  0xd8   :  { %99 = vadd.xlane.f32.xlu1 %v98_v17 }
  0xda   :  { %v188_v18 = vpop.eup %187 }
  0xdb   :  { %v65_v19 = vsel %vm58_vm0, %v188_v18, 0.0 }
  0xdc   :  { %v190_v20 = vpop.eup %189  ;;  %66 = vadd.xlane.f32.xlu0 %v65_v19 }
  0xdd   :  { %v86_v21 = vsel %vm58_vm0, %v190_v20, 0.0 }
  0xe0   :  { %87 = vadd.xlane.f32.xlu0 %v86_v21 }
  0xe9   :  { %72 = vperm.xlu1 %183, %v55_v22  }
 0x165   :  { %v100_v24 = vpop.xlane.xlu1 %99 }
 0x166   :  { %191 = vrcp.f32 %v100_v24 }
 0x167   :  { %193 = vlog2.f32 %v100_v24 }
 0x169   :  { %v73_v26 = vpop.permute.xlu1 %72  ;;  %v67_v38 = vpop.xlane.xlu0 %66 }
 0x16a   :  { %vm74_vm1 = vcmp.eq.s32.totalorder %v57_v25, %v73_v26  ;;  %195 = vlog2.f32 %v67_v38 }
 0x16b   :  { %v75_v27 = vsel %vm74_vm1, %v53_v2, 0.0 }
 0x16c   :  { %v76_v28 = vsel %vm58_vm0, %v75_v27, 0.0 }
 0x16d   :  { %77 = vadd.xlane.f32.xlu1 %v76_v28  ;;  %v88_v40 = vpop.xlane.xlu0 %87 }
 0x16e   :  { %197 = vlog2.f32 %v88_v40 }
 0x170   :  { %v192_v29 = vpop.eup %191 }
 0x171   :  { %v194_v30 = vpop.eup %193  ;;  %v103_v31 = vmul.f32 %v192_v29, %v186_v16 }
 0x172   :  { %v105_v32 = vmul.f32 0.6931472, %v194_v30 }
 0x173   :  { %v111_v33 = vmul.f32 %v103_v31, %v53_v2 }
 0x174   :  { %v106_v34 = vsub.f32 %v95_v7, %v105_v32  ;;  %v196_v39 = vpop.eup %195 }
 0x175   :  { %v112_v35 = vsel %vm58_vm0, %v111_v33, 0.0  ;;  %v69_v41 = vmul.f32 0.6931472, %v196_v39 }
 0x176   :  { %113 = vadd.xlane.f32.xlu0 %v112_v35  ;;  %v107_v36 = vmul.f32 %v106_v34, %v103_v31 }
 0x177   :  { %v70_v42 = vadd.f32 %v69_v41, %v61_v10 }
 0x178   :  { %v108_v37 = vsel %vm58_vm0, %v107_v36, 0.0  ;;  %v198_v46 = vpop.eup %197 }
 0x179   :  { %v90_v48 = vmul.f32 0.6931472, %v198_v46 }
 0x17a   :  { %109 = vadd.xlane.f32.xlu0 %v108_v37 }
 0x17b   :  { %v91_v52 = vadd.f32 %v90_v48, %v82_v12 }
 0x1fa   :  { %v78_v43 = vpop.xlane.xlu1 %77 }
 0x1fb   :  { %v79_v44 = vsub.f32 %v70_v42, %v78_v43 }
 0x1fd   :  { %v119_v45 = vsel %vm118_vm2, %v79_v44, 0.0 }
 0x1fe   :  { %120 = vadd.xlane.f32.xlu0 %v119_v45 }
 0x203   :  { %v114_v47 = vpop.xlane.xlu0 %113 }
 0x204   :  { %v115_v49 = vmul.f32 0.25, %v114_v47 }
 0x207   :  { %v110_v50 = vpop.xlane.xlu0 %109 }
 0x208   :  { %v116_v51 = vsub.f32 %v110_v50, %v115_v49 }
 0x20a   :  { %v117_v53 = vadd.f32 %v116_v51, %v91_v52 }
 0x20c   :  { %v129_v54 = vsel %vm118_vm2, %v117_v53, 0.0 }
 0x20d   :  { %130 = vadd.xlane.f32.xlu0 %v129_v54 }
 0x28b   :  { %v121_v55 = vpop.xlane.xlu0 %120 }
 0x28c   :  { %v122_v56 = vrot.slane %v121_v55, 4 }
 0x28e   :  { %v123_v57 = vadd.f32 %v122_v56, %v121_v55 }
 0x290   :  { %v124_v58 = vrot.slane %v123_v57, 2 }
 0x292   :  { %v125_v59 = vadd.f32 %v124_v58, %v123_v57 }
 0x294   :  { %v126_v60 = vrot.slane %v125_v59, 1 }
 0x296   :  { %v127_v61 = vadd.f32 %v126_v60, %v125_v59 }
 0x298   :  { %173 = vpush %v127_v61 }
 0x29a   :  { %v131_v62 = vpop.xlane.xlu0 %130 }
 0x29b   :  { %v132_v63 = vrot.slane %v131_v62, 4 }
 0x29d   :  { %v133_v0 = vadd.f32 %v132_v63, %v131_v62 }
 0x29f   :  { %v134_v1 = vrot.slane %v133_v0, 2 }
 0x2a1   :  { %v135_v2 = vadd.f32 %v134_v1, %v133_v0 }
 0x2a3   :  { %v136_v3 = vrot.slane %v135_v2, 1 }
 0x2a5   :  { %v137_v4 = vadd.f32 %v136_v3, %v135_v2 }
 0x2a7   :  { %175 = vpush %v137_v4 }
 0x2c9   :  { %s174_s24 = spop %173 }
 0x2ca   :  { %v139_v5 = vstv %s174_s24 }
 0x2cb   :  { %140 = vst [vmem:[#allocation8] sm:$0x1] %v139_v5 }
 0x2cc   :  { %276 = shalt.err (!%p273_p0)
}
 0x2cd   :  { %s277_s29 = scalar_lea.hbm %s419_s3, 16 }
 0x2ce   :  { %p278_p1 = scmp.ne.s32.totalorder %s419_s3, %s277_s29  ;;  %p281_p2 = scmp.lt.u32.totalorder %s277_s29, %s419_s3 }
 0x2d0   :  { %p283_p3 = pnand %p281_p2, %p278_p1 }
 0x2d2   :  { %286 = shalt.err (!%p283_p3)
}
 0x2d3   :  { %152 = dma.vmem_to_hbm [thread:$0]  %s150_s23, 16, %s419_s3, [#allocation4]  }
 0x2d4   :  { %s322_s10 = smov [#allocation9]  }
 0x2d5   :  { %s159_s1 = sshll.u32 %s322_s10, 4  ;;  %s160_s1 = int_to_ptr.vmem [resolvable:$true] %s159_s1 }
 0x2d6   :  { %s287_s12 = scalar_lea.vmem %s160_s1, 16  ;;  %s291_s13 = scalar_lea.vmem %s160_s1, 32 }
 0x2d7   :  { %p288_p4 = scmp.ne.s32.totalorder %s160_s1, %s287_s12  ;;  %p292_p5 = scmp.lt.s32.totalorder %s160_s1, %s160_s1 }
 0x2d8   :  { %s176_s11 = spop %175  ;;  %p293_p6 = scmp.lt.s32.totalorder %s291_s13, %s287_s12 }
 0x2d9   :  { %v141_v6 = vstv %s176_s11 }
 0x2da   :  { %142 = vst [vmem:[#allocation9] sm:$0x1] %v141_v6  ;;  %p294_p7 = por %p293_p6, %p292_p5 }
 0x2dc   :  { %p295_p8 = pnand %p294_p7, %p288_p4 }
 0x2de   :  { %298 = shalt.err (!%p295_p8)
}
 0x2df   :  { %s299_s16 = scalar_lea.hbm %s420_s4, 16 }
 0x2e0   :  { %p300_p9 = scmp.ne.s32.totalorder %s420_s4, %s299_s16  ;;  %p303_p10 = scmp.lt.u32.totalorder %s299_s16, %s420_s4 }
 0x2e2   :  { %p305_p11 = pnand %p303_p10, %p300_p9 }
 0x2e4   :  { %308 = shalt.err (!%p305_p11)
}
 0x2e5   :  { %162 = dma.vmem_to_hbm [thread:$0]  %s160_s1, 16, %s420_s4, [#allocation10]  }
 0x2e6   :  { %313 = dma.done.wait [#allocation4], 16  }
 0x2e7   :  { %314 = vsyncadd [#allocation4], 4294967280 }
 0x2e8   :  { %315 = dma.done.wait [#allocation10], 16  }
 0x2e9   :  { %316 = vsyncadd [#allocation10], 4294967280 }
 0x2ea   :  { %169 = vsyncpa [#allocation3], 1 }
 0x2eb   :  { %170 = vsyncpa [#allocation6], 1 }
 0x2ec   :  { %171 = vsyncpa [#allocation4], 1 }
 0x2ed   :  { %172 = vsyncpa [#allocation10], 1 }

</bundles_post_ra>
